<compile_context>
chip_gen: v7x
topology: tpu7x:2x2x1
jax: 0.10.0
libtpu: 0.0.40
codegen_flags: <defaults>
</compile_context>

<pallas_src>
import numpy as np
import jax
import jax.numpy as jnp
from jax.experimental import pallas as pl
from jax.experimental.pallas import tpu as pltpu


# ---------------------------------------------------------------------------
# Pallas kernel: one batch tile (Bt examples) per grid step.
# ---------------------------------------------------------------------------
def selector_kernel(
    enc_ref,         # (Bt, Lp, E)   bf16
    sq_ref,          # (Bt, D+E)     bf16   [s | mixture_emb]
    mask_ref,        # (Bt, Lp)      f32    1.0 => pad position
    ws_ref,          # (D+E, A)      f32    [0; Ws]  (zero rows for s)
    attn_small_ref,  # (2, A)        f32    row0 = bs, row1 = v
    w_enc_ref,       # (E, A_pad+2D) f32    [Wh | 0-pad | W1_enc]
    w_sqc_ref,       # (D+2E, 2D)    f32    vstack([W1_s, W1_q, W1_ctx])
    mlp_small_ref,   # (2, 2D)       f32    row0 = [b1a|b1b], row1 = [w2a|w2b]
    b2_ref,          # (2,)          SMEM   [b2a, b2b]
    out_ref,         # (Bt, E + 2*Lp)       [ctx | logit1 | logit2]
):
    f32 = jnp.float32
    Bt, Lp, E = enc_ref.shape
    A = ws_ref.shape[1]
    D2 = w_sqc_ref.shape[1]
    D = D2 // 2
    A_pad = w_enc_ref.shape[1] - D2

    # bf16 storage -> f32 compute (v5e VPU/EUP have no bf16).
    enc3 = enc_ref[...].astype(f32)                        # (Bt, Lp, E)
    enc2 = enc3.reshape(Bt * Lp, E)                        # layout-free (Lp % 8 == 0)
    sq = sq_ref[...].astype(f32)                           # (Bt, D+E)
    mask = mask_ref[...]                                   # (Bt, Lp)

    # --- fused enc-side matmul: attention keys (A) and MLP enc term (2D) in one pass
    enc_proj = jnp.dot(enc2, w_enc_ref[...],
                       preferred_element_type=f32).reshape(Bt, Lp, A_pad + D2)
    keys = enc_proj[..., :A]                               # (Bt, Lp, A)
    pos = enc_proj[..., A_pad:]                            # (Bt, Lp, 2D), tile-aligned slice

    # --- Bahdanau attention: score_bl = v . tanh(Wh e_bl + Ws q_b + bs) ---
    bs = attn_small_ref[0:1, :]                            # (1, A)
    v_row = attn_small_ref[1:2, :]                         # (1, A)
    query = jnp.dot(sq, ws_ref[...], preferred_element_type=f32) + bs   # (Bt, A)
    energy = jnp.tanh(keys + query[:, None, :])            # (Bt, Lp, A)
    score = jnp.sum(energy * v_row[None, :, :], axis=-1)   # (Bt, Lp) lane-reduce
    score = jnp.where(mask > 0.5, jnp.float32(-1e30), score)

    # masked softmax over L (lane axis); exact normalization (cheap, Bt values)
    m = jnp.max(score, axis=-1, keepdims=True)
    p = jnp.exp(score - m)
    attn = p / jnp.sum(p, axis=-1, keepdims=True)

    # --- context = sum_l attn[b,l] * enc[b,l,:] ---
    ctx = jnp.sum(attn[:, :, None] * enc3, axis=1)         # (Bt, E)

    # --- fused two-head MLP (concat over C never materialized) ---
    # row bias: one MXU pass over the lane-concat [s | mix | ctx]
    row_in = jnp.concatenate([sq, ctx], axis=-1)           # (Bt, D+2E)
    row_bias = (jnp.dot(row_in, w_sqc_ref[...], preferred_element_type=f32)
                + mlp_small_ref[0:1, :])                   # (Bt, 2D)
    h = jnp.tanh(pos + row_bias[:, None, :])               # (Bt, Lp, 2D)

    # two (D,1) output heads: one multiply against [w2a | w2b], two D-lane reduces
    w2 = mlp_small_ref[1:2, :]                             # (1, 2D)
    hw = h * w2[None, :, :]                                # (Bt, Lp, 2D)
    logit1 = jnp.sum(hw[..., :D], axis=-1) + b2_ref[0]     # (Bt, Lp)
    logit2 = jnp.sum(hw[..., D:], axis=-1) + b2_ref[1]     # (Bt, Lp)

    # single packed, full-width store (one writeback DMA stream per step)
    out_ref[...] = jnp.concatenate([ctx, logit1, logit2], axis=-1).astype(out_ref.dtype)


# ---------------------------------------------------------------------------
# Tiling helpers: VMEM-byte-budget-driven batch-tile selection.
# ---------------------------------------------------------------------------
def _round_up(x, m):
    return (x + m - 1) // m * m


def _tile_bytes(bt, Lp, E, D, A_pad):
    """Rough per-grid-step VMEM footprint (inputs double-buffered + temporaries)."""
    D2 = 2 * D
    rows = bt * Lp
    return (2 * rows * E * 2               # enc tile, bf16, double buffered
            + 2 * bt * (D + E) * 2         # [s|mix] tile, bf16, double buffered
            + 2 * bt * Lp * 4              # mask tile, f32, double buffered
            + 2 * bt * (E + 2 * Lp) * 4    # packed output tile, double buffered
            + rows * E * 4                 # f32 upcast of enc
            + rows * (A_pad + D2) * 4      # fused enc-side matmul result
            + rows * A_pad * 4             # attention energy
            + 2 * rows * D2 * 4)           # h and h*w2


def _pick_block_b(B_pad, Lp, E, D, A_pad, budget_bytes):
    """Largest batch tile (multiple of 8 dividing B_pad, or B_pad when B_pad <= 8)
    whose estimated per-step footprint fits the VMEM budget."""
    if B_pad <= 8:
        return B_pad
    cands = [bt for bt in range(8, B_pad + 1, 8) if B_pad % bt == 0]
    fitting = [bt for bt in cands if _tile_bytes(bt, Lp, E, D, A_pad) <= budget_bytes]
    if not fitting:
        fitting = [cands[0]]
    bt = max(fitting)
    # keep >= 2 grid steps when possible so the "parallel" batch axis can split
    # across TensorCores (v7x megacore).
    if bt == B_pad:
        halves = [c for c in fitting if c <= B_pad // 2]
        if halves:
            bt = max(halves)
    return bt


# ---------------------------------------------------------------------------
# Wrapper: grid over batch tiles, weights replicated (constant index_map).
# ---------------------------------------------------------------------------
def parallel_decoder_forward(enc_outputs, s, mixture_emb, pad_mask_f, params,
                             block_b=None, vmem_budget_bytes=40 * 1024 * 1024):
    f32, bf16 = jnp.float32, jnp.bfloat16
    B, L, E = enc_outputs.shape
    D = s.shape[-1]
    A = params["Ws"].shape[-1]
    D2 = 2 * D
    A_pad = _round_up(A, 128)          # 128-aligned split in the fused enc weight
    Lp = _round_up(L, 8)               # sublane-aligned L -> layout-free reshapes
    B_pad = B if B <= 8 else _round_up(B, 8)

    # --- pack / fuse the parameters once, outside the kernel ---
    W1 = jnp.concatenate([params["W1a"], params["W1b"]], axis=1).astype(f32)  # (C, 2D)
    w1_enc = W1[:E]
    w1_s = W1[E:E + D]
    w1_c = W1[E + D:E + D + E]
    w1_q = W1[E + D + E:]

    pad_cols = A_pad - A
    enc_parts = [params["Wh"].astype(f32)]
    if pad_cols:
        enc_parts.append(jnp.zeros((E, pad_cols), f32))
    enc_parts.append(w1_enc)
    w_enc = jnp.concatenate(enc_parts, axis=1)                        # (E, A_pad + 2D)

    w_sqc = jnp.concatenate([w1_s, w1_q, w1_c], axis=0)               # (D+2E, 2D)
    ws_full = jnp.concatenate([jnp.zeros((D, A), f32),
                               params["Ws"].astype(f32)], axis=0)     # (D+E, A)
    attn_small = jnp.concatenate([params["bs"].reshape(1, A),
                                  params["v"].reshape(1, A)], axis=0).astype(f32)
    b1 = jnp.concatenate([params["b1a"], params["b1b"]], axis=1).astype(f32)   # (1, 2D)
    w2 = jnp.concatenate([params["W2a"].reshape(1, D),
                          params["W2b"].reshape(1, D)], axis=1).astype(f32)    # (1, 2D)
    mlp_small = jnp.concatenate([b1, w2], axis=0)                     # (2, 2D)
    b2 = jnp.stack([params["b2a"].reshape(()),
                    params["b2b"].reshape(())]).astype(f32)           # (2,)

    # --- pack / pad activations; bf16 HBM storage for the mem-bound streams ---
    sq = jnp.concatenate([s, mixture_emb], axis=-1)                   # (B, D+E)
    enc_p = jnp.pad(enc_outputs.astype(f32),
                    ((0, B_pad - B), (0, Lp - L), (0, 0))).astype(bf16)
    sq_p = jnp.pad(sq.astype(f32), ((0, B_pad - B), (0, 0))).astype(bf16)
    mask_p = jnp.pad(pad_mask_f.astype(f32),
                     ((0, B_pad - B), (0, Lp - L)), constant_values=1.0)

    weight_bytes = 2 * 4 * (E * (A_pad + D2) + (D + 2 * E) * D2
                            + (D + E) * A + 2 * A + 2 * D2)
    if block_b is None:
        Bt = _pick_block_b(B_pad, Lp, E, D, A_pad,
                           budget_bytes=max(vmem_budget_bytes - weight_bytes,
                                            4 * 1024 * 1024))
    else:
        Bt = block_b
    assert B_pad % Bt == 0
    num_steps = B_pad // Bt

    vmem_limit = int(min(max(weight_bytes + 2 * _tile_bytes(Bt, Lp, E, D, A_pad),
                             32 * 1024 * 1024),
                         48 * 1024 * 1024))   # safe on v7x's 64 MiB, plenty on v5e/v6e

    batched3 = lambda b: (b, 0, 0)
    batched2 = lambda b: (b, 0)
    const2 = lambda b: (0, 0)

    in_specs = [
        # NOTE: if xprof shows exposed enc DMA between steps, add
        # pipeline_mode=pl.Buffered(3) on this spec.
        pl.BlockSpec((Bt, Lp, E), batched3),          # enc_outputs (bf16)
        pl.BlockSpec((Bt, D + E), batched2),          # [s | mixture_emb] (bf16)
        pl.BlockSpec((Bt, Lp), batched2),             # pad mask
        pl.BlockSpec((D + E, A), const2),             # [0; Ws]
        pl.BlockSpec((2, A), const2),                 # [bs; v]
        pl.BlockSpec((E, A_pad + D2), const2),        # [Wh | 0 | W1_enc]
        pl.BlockSpec((D + 2 * E, D2), const2),        # [W1_s; W1_q; W1_ctx]
        pl.BlockSpec((2, D2), const2),                # [b1; w2]
        pl.BlockSpec(memory_space=pltpu.MemorySpace.SMEM),   # [b2a, b2b] scalars
    ]
    out_specs = pl.BlockSpec((Bt, E + 2 * Lp), batched2)
    out_shape = jax.ShapeDtypeStruct((B_pad, E + 2 * Lp), f32)

    out = pl.pallas_call(
        selector_kernel,
        out_shape=out_shape,
        grid_spec=pltpu.PrefetchScalarGridSpec(
            num_scalar_prefetch=0,
            grid=(num_steps,),
            in_specs=in_specs,
            out_specs=out_specs,
        ),
        compiler_params=pltpu.CompilerParams(
            dimension_semantics=("parallel",),
            vmem_limit_bytes=vmem_limit,
        ),
    )(enc_p, sq_p, mask_p, ws_full, attn_small, w_enc, w_sqc, mlp_small, b2)

    pos_context = out[:B, :E]
    focus_logit = out[:B, E:E + L]
    focus_segment_logit = out[:B, E + Lp:E + Lp + L]
    return pos_context, focus_logit, focus_segment_logit


# ---------------------------------------------------------------------------
# Pure-JAX reference (semantics of the PyTorch forward, train=True path).
# ---------------------------------------------------------------------------
def reference_forward(enc, s, mix, mask, p):
    B, L, _ = enc.shape
    keys = enc @ p["Wh"]                                   # (B, L, A)
    query = mix @ p["Ws"] + p["bs"]                        # (B, A)
    energy = jnp.tanh(keys + query[:, None, :])
    score = jnp.einsum("bla,a->bl", energy, p["v"].reshape(-1))
    score = jnp.where(mask > 0.5, -1e30, score)
    attn = jax.nn.softmax(score, axis=-1)
    ctx = jnp.einsum("bl,ble->be", attn, enc)              # (B, E)
    concat = jnp.concatenate(
        [enc,
         jnp.broadcast_to(s[:, None, :], (B, L, s.shape[1])),
         jnp.broadcast_to(ctx[:, None, :], (B, L, ctx.shape[1])),
         jnp.broadcast_to(mix[:, None, :], (B, L, mix.shape[1]))],
        axis=2)
    h1 = jnp.tanh(concat @ p["W1a"] + p["b1a"])
    l1 = (h1 @ p["W2a"])[..., 0] + p["b2a"][0, 0]
    h2 = jnp.tanh(concat @ p["W1b"] + p["b1b"])
    l2 = (h2 @ p["W2b"])[..., 0] + p["b2b"][0, 0]
    return ctx, l1, l2


def _make_params(key, E, D, A, C):
    scale = 0.05
    ks = jax.random.split(key, 12)
    return {
        # BahdanauAttention2 (assumed additive attention)
        "Wh": scale * jax.random.normal(ks[0], (E, A), jnp.float32),
        "Ws": scale * jax.random.normal(ks[1], (E, A), jnp.float32),
        "bs": scale * jax.random.normal(ks[2], (1, A), jnp.float32),
        "v": scale * jax.random.normal(ks[3], (A, 1), jnp.float32),
        # out_mlp1: Linear(C, D) -> Tanh -> Linear(D, 1)
        "W1a": scale * jax.random.normal(ks[4], (C, D), jnp.float32),
        "b1a": scale * jax.random.normal(ks[5], (1, D), jnp.float32),
        "W2a": scale * jax.random.normal(ks[6], (D, 1), jnp.float32),
        "b2a": scale * jax.random.normal(ks[7], (1, 1), jnp.float32),
        # out_mlp2
        "W1b": scale * jax.random.normal(ks[8], (C, D), jnp.float32),
        "b1b": scale * jax.random.normal(ks[9], (1, D), jnp.float32),
        "W2b": scale * jax.random.normal(ks[10], (D, 1), jnp.float32),
        "b2b": jnp.zeros((1, 1), jnp.float32),
    }


def _run_and_check(B, L, E, D, A, seed):
    C = E + D + E + E
    key = jax.random.PRNGKey(seed)
    ks = jax.random.split(key, 6)

    enc_outputs = jax.random.normal(ks[0], (B, L, E), jnp.float32)
    s = jax.random.normal(ks[1], (B, D), jnp.float32)
    mixture_id = jax.random.randint(ks[2], (B,), 0, 5)
    source_WORD_encoding = jax.random.randint(ks[3], (B, L), 1, 100)
    source_WORD_encoding = source_WORD_encoding.at[B - 1, L - 2:].set(0)  # trailing pad
    pad_mask_f = (source_WORD_encoding == 0).astype(jnp.float32)

    emb_table = 0.05 * jax.random.normal(ks[4], (400, E), jnp.float32)
    params = _make_params(ks[5], E, D, A, C)
    mixture_emb = emb_table[mixture_id]                     # (B, E) gather in plain JAX

    pos_context, focus_logit, focus_segment_logit = jax.block_until_ready(
        parallel_decoder_forward(enc_outputs, s, mixture_emb, pad_mask_f, params)
    )

    # Reference on the same bf16-rounded activation streams (the kernel stores
    # enc / s / mix in bf16 in HBM and upcasts to f32 in-kernel).
    rd = lambda x: x.astype(jnp.bfloat16).astype(jnp.float32)
    ref_ctx, ref_l1, ref_l2 = reference_forward(
        rd(enc_outputs), rd(s), rd(mixture_emb), pad_mask_f, params)

    assert pos_context.shape == (B, E)
    assert focus_logit.shape == (B, L)
    assert focus_segment_logit.shape == (B, L)
    assert np.allclose(np.asarray(pos_context), np.asarray(ref_ctx), rtol=1e-2, atol=1e-2)
    assert np.allclose(np.asarray(focus_logit), np.asarray(ref_l1), rtol=1e-2, atol=1e-2)
    assert np.allclose(np.asarray(focus_segment_logit), np.asarray(ref_l2),
                       rtol=1e-2, atol=1e-2)


if __name__ == "__main__":
    # Small shapes: B=2, L=8 source tokens, enc_hidden=dec_hidden=attn_hidden=32
    _run_and_check(B=2, L=8, E=32, D=32, A=32, seed=0)
    # Exercise the padding path (L not a multiple of 8, odd batch).
    _run_and_check(B=3, L=7, E=32, D=32, A=32, seed=1)
    print("KERNEL_OK")
</pallas_src>

<mosaic_0001>
module attributes {stable_mosaic.version = 11 : i64} {
  func.func @selector_kernel(%arg0: i32, %arg1: memref<2x8x32xbf16, #tpu.memory_space<vmem>>, %arg2: memref<2x64xbf16, #tpu.memory_space<vmem>>, %arg3: memref<2x8xf32, #tpu.memory_space<vmem>>, %arg4: memref<64x32xf32, #tpu.memory_space<vmem>>, %arg5: memref<2x32xf32, #tpu.memory_space<vmem>>, %arg6: memref<32x192xf32, #tpu.memory_space<vmem>>, %arg7: memref<96x64xf32, #tpu.memory_space<vmem>>, %arg8: memref<2x64xf32, #tpu.memory_space<vmem>>, %arg9: memref<2xf32, #tpu.memory_space<smem>>, %arg10: memref<2x48xf32, #tpu.memory_space<vmem>>) attributes {dimension_semantics = [#tpu.dimension_semantics<parallel>], iteration_bounds = array<i64: 1>, scalar_prefetch = 0 : i64, scratch_operands = 0 : i64, tpu.core_type = #tpu.core_type<tc>, window_params = [{transform_indices = @transform_0, window_bounds = array<i64: 2, 8, 32>}, {transform_indices = @transform_1, window_bounds = array<i64: 2, 64>}, {transform_indices = @transform_2, window_bounds = array<i64: 2, 8>}, {pipeline_mode = #tpu.pipeline_mode<synchronous>, transform_indices = @transform_3, window_bounds = array<i64: 64, 32>}, {pipeline_mode = #tpu.pipeline_mode<synchronous>, transform_indices = @transform_4, window_bounds = array<i64: 2, 32>}, {pipeline_mode = #tpu.pipeline_mode<synchronous>, transform_indices = @transform_5, window_bounds = array<i64: 32, 192>}, {pipeline_mode = #tpu.pipeline_mode<synchronous>, transform_indices = @transform_6, window_bounds = array<i64: 96, 64>}, {pipeline_mode = #tpu.pipeline_mode<synchronous>, transform_indices = @transform_7, window_bounds = array<i64: 2, 64>}, {transform_indices = @transform_8, window_bounds = array<i64: 2>}, {transform_indices = @transform_9, window_bounds = array<i64: 2, 48>}]} {
    %c0 = arith.constant 0 : index
    %c0_0 = arith.constant 0 : index
    %c0_1 = arith.constant 0 : index
    %0 = vector.load %arg1[%c0, %c0_0, %c0_1] : memref<2x8x32xbf16, #tpu.memory_space<vmem>>, vector<2x8x32xbf16>
    %1 = arith.extf %0 : vector<2x8x32xbf16> to vector<2x8x32xf32>
    %2 = vector.shape_cast %1 : vector<2x8x32xf32> to vector<16x32xf32>
    %c0_2 = arith.constant 0 : index
    %c0_3 = arith.constant 0 : index
    %3 = vector.load %arg2[%c0_2, %c0_3] : memref<2x64xbf16, #tpu.memory_space<vmem>>, vector<2x64xbf16>
    %4 = arith.extf %3 : vector<2x64xbf16> to vector<2x64xf32>
    %c0_4 = arith.constant 0 : index
    %c0_5 = arith.constant 0 : index
    %5 = vector.load %arg3[%c0_4, %c0_5] : memref<2x8xf32, #tpu.memory_space<vmem>>, vector<2x8xf32>
    %c0_6 = arith.constant 0 : index
    %c0_7 = arith.constant 0 : index
    %6 = vector.load %arg6[%c0_6, %c0_7] : memref<32x192xf32, #tpu.memory_space<vmem>>, vector<32x192xf32>
    %cst = arith.constant dense<0.000000e+00> : vector<16x192xf32>
    %7 = tpu.matmul %2, %6, %cst {dimension_numbers = #tpu.dot_dimension_numbers<[1], [0], [0], [1], [0, 0, 1, 1], [], []>} : vector<16x32xf32>, vector<32x192xf32>, vector<16x192xf32> -> vector<16x192xf32>
    %8 = vector.shape_cast %7 : vector<16x192xf32> to vector<2x8x192xf32>
    %9 = vector.extract_strided_slice %8 {offsets = [0, 0, 0], sizes = [2, 8, 32], strides = [1, 1, 1]} : vector<2x8x192xf32> to vector<2x8x32xf32>
    %10 = vector.extract_strided_slice %8 {offsets = [0, 0, 128], sizes = [2, 8, 64], strides = [1, 1, 1]} : vector<2x8x192xf32> to vector<2x8x64xf32>
    %c0_8 = arith.constant 0 : index
    %c0_9 = arith.constant 0 : index
    %11 = vector.load %arg5[%c0_8, %c0_9] : memref<2x32xf32, #tpu.memory_space<vmem>>, vector<1x32xf32>
    %c1 = arith.constant 1 : index
    %c0_10 = arith.constant 0 : index
    %12 = vector.load %arg5[%c1, %c0_10] : memref<2x32xf32, #tpu.memory_space<vmem>>, vector<1x32xf32>
    %c0_11 = arith.constant 0 : index
    %c0_12 = arith.constant 0 : index
    %13 = vector.load %arg4[%c0_11, %c0_12] : memref<64x32xf32, #tpu.memory_space<vmem>>, vector<64x32xf32>
    %cst_13 = arith.constant dense<0.000000e+00> : vector<2x32xf32>
    %14 = tpu.matmul %4, %13, %cst_13 {dimension_numbers = #tpu.dot_dimension_numbers<[1], [0], [0], [1], [0, 0, 1, 1], [], []>} : vector<2x64xf32>, vector<64x32xf32>, vector<2x32xf32> -> vector<2x32xf32>
    %15 = vector.broadcast %11 : vector<1x32xf32> to vector<2x32xf32>
    %16 = arith.addf %14, %15 : vector<2x32xf32>
    %17 = vector.shape_cast %16 : vector<2x32xf32> to vector<2x1x32xf32>
    %18 = vector.broadcast %17 : vector<2x1x32xf32> to vector<2x8x32xf32>
    %19 = arith.addf %9, %18 : vector<2x8x32xf32>
    %20 = math.tanh %19 : vector<2x8x32xf32>
    %21 = vector.shape_cast %12 : vector<1x32xf32> to vector<1x1x32xf32>
    %22 = vector.broadcast %21 : vector<1x1x32xf32> to vector<2x8x32xf32>
    %23 = arith.mulf %20, %22 : vector<2x8x32xf32>
    %cst_14 = arith.constant dense<0.000000e+00> : vector<2x8xf32>
    %24 = vector.multi_reduction <add>, %23, %cst_14 [2] : vector<2x8x32xf32> to vector<2x8xf32>
    %cst_15 = arith.constant 5.000000e-01 : f32
    %25 = vector.broadcast %cst_15 : f32 to vector<2x8xf32>
    %26 = arith.cmpf ogt, %5, %25 : vector<2x8xf32>
    %cst_16 = arith.constant -1.000000e+30 : f32
    %27 = vector.broadcast %cst_16 : f32 to vector<2x8xf32>
    %28 = arith.select %26, %27, %24 : vector<2x8xi1>, vector<2x8xf32>
    %cst_17 = arith.constant dense<0xFF800000> : vector<2xf32>
    %29 = vector.multi_reduction <maximumf>, %28, %cst_17 [1] : vector<2x8xf32> to vector<2xf32>
    %30 = vector.shape_cast %29 : vector<2xf32> to vector<2x1xf32>
    %31 = vector.broadcast %30 : vector<2x1xf32> to vector<2x8xf32>
    %32 = arith.subf %28, %31 : vector<2x8xf32>
    %33 = math.exp %32 : vector<2x8xf32>
    %cst_18 = arith.constant dense<0.000000e+00> : vector<2xf32>
    %34 = vector.multi_reduction <add>, %33, %cst_18 [1] : vector<2x8xf32> to vector<2xf32>
    %35 = vector.shape_cast %34 : vector<2xf32> to vector<2x1xf32>
    %36 = vector.broadcast %35 : vector<2x1xf32> to vector<2x8xf32>
    %37 = arith.divf %33, %36 : vector<2x8xf32>
    %38 = vector.shape_cast %37 : vector<2x8xf32> to vector<2x8x1xf32>
    %39 = vector.broadcast %38 : vector<2x8x1xf32> to vector<2x8x32xf32>
    %40 = arith.mulf %39, %1 : vector<2x8x32xf32>
    %cst_19 = arith.constant dense<0.000000e+00> : vector<2x32xf32>
    %41 = vector.multi_reduction <add>, %40, %cst_19 [1] : vector<2x8x32xf32> to vector<2x32xf32>
    %42 = tpu.concatenate %4, %41 in 1 : vector<2x64xf32>, vector<2x32xf32> -> vector<2x96xf32>
    %c0_20 = arith.constant 0 : index
    %c0_21 = arith.constant 0 : index
    %43 = vector.load %arg7[%c0_20, %c0_21] : memref<96x64xf32, #tpu.memory_space<vmem>>, vector<96x64xf32>
    %cst_22 = arith.constant dense<0.000000e+00> : vector<2x64xf32>
    %44 = tpu.matmul %42, %43, %cst_22 {dimension_numbers = #tpu.dot_dimension_numbers<[1], [0], [0], [1], [0, 0, 1, 1], [], []>} : vector<2x96xf32>, vector<96x64xf32>, vector<2x64xf32> -> vector<2x64xf32>
    %c0_23 = arith.constant 0 : index
    %c0_24 = arith.constant 0 : index
    %45 = vector.load %arg8[%c0_23, %c0_24] : memref<2x64xf32, #tpu.memory_space<vmem>>, vector<1x64xf32>
    %46 = vector.broadcast %45 : vector<1x64xf32> to vector<2x64xf32>
    %47 = arith.addf %44, %46 : vector<2x64xf32>
    %48 = vector.shape_cast %47 : vector<2x64xf32> to vector<2x1x64xf32>
    %49 = vector.broadcast %48 : vector<2x1x64xf32> to vector<2x8x64xf32>
    %50 = arith.addf %10, %49 : vector<2x8x64xf32>
    %51 = math.tanh %50 : vector<2x8x64xf32>
    %c1_25 = arith.constant 1 : index
    %c0_26 = arith.constant 0 : index
    %52 = vector.load %arg8[%c1_25, %c0_26] : memref<2x64xf32, #tpu.memory_space<vmem>>, vector<1x64xf32>
    %53 = vector.shape_cast %52 : vector<1x64xf32> to vector<1x1x64xf32>
    %54 = vector.broadcast %53 : vector<1x1x64xf32> to vector<2x8x64xf32>
    %55 = arith.mulf %51, %54 : vector<2x8x64xf32>
    %56 = vector.extract_strided_slice %55 {offsets = [0, 0, 0], sizes = [2, 8, 32], strides = [1, 1, 1]} : vector<2x8x64xf32> to vector<2x8x32xf32>
    %cst_27 = arith.constant dense<0.000000e+00> : vector<2x8xf32>
    %57 = vector.multi_reduction <add>, %56, %cst_27 [2] : vector<2x8x32xf32> to vector<2x8xf32>
    %c0_28 = arith.constant 0 : index
    %58 = memref.load %arg9[%c0_28] : memref<2xf32, #tpu.memory_space<smem>>
    %59 = vector.broadcast %58 : f32 to vector<2x8xf32>
    %60 = arith.addf %57, %59 : vector<2x8xf32>
    %61 = vector.extract_strided_slice %55 {offsets = [0, 0, 32], sizes = [2, 8, 32], strides = [1, 1, 1]} : vector<2x8x64xf32> to vector<2x8x32xf32>
    %cst_29 = arith.constant dense<0.000000e+00> : vector<2x8xf32>
    %62 = vector.multi_reduction <add>, %61, %cst_29 [2] : vector<2x8x32xf32> to vector<2x8xf32>
    %c1_30 = arith.constant 1 : index
    %63 = memref.load %arg9[%c1_30] : memref<2xf32, #tpu.memory_space<smem>>
    %64 = vector.broadcast %63 : f32 to vector<2x8xf32>
    %65 = arith.addf %62, %64 : vector<2x8xf32>
    %66 = tpu.concatenate %41, %60, %65 in 1 : vector<2x32xf32>, vector<2x8xf32>, vector<2x8xf32> -> vector<2x48xf32>
    %c0_31 = arith.constant 0 : index
    %c0_32 = arith.constant 0 : index
    %67 = vector.load %arg10[%c0_31, %c0_32] : memref<2x48xf32, #tpu.memory_space<vmem>>, vector<2x48xf32>
    tpu.vector_store %arg10[%c0_31, %c0_32], %66 {strides = array<i32>} : memref<2x48xf32, #tpu.memory_space<vmem>>, vector<2x48xf32>,
    return
  }
  func.func @transform_0(%arg0: i32) -> (i32, i32, i32) {
    %c0_i32 = arith.constant 0 : i32
    %c0_i32_0 = arith.constant 0 : i32
    %c0_i32_1 = arith.constant 0 : i32
    return %arg0, %c0_i32, %c0_i32_0 : i32, i32, i32
  }
  func.func @transform_1(%arg0: i32) -> (i32, i32) {
    %c0_i32 = arith.constant 0 : i32
    %c0_i32_0 = arith.constant 0 : i32
    return %arg0, %c0_i32 : i32, i32
  }
  func.func @transform_2(%arg0: i32) -> (i32, i32) {
    %c0_i32 = arith.constant 0 : i32
    %c0_i32_0 = arith.constant 0 : i32
    return %arg0, %c0_i32 : i32, i32
  }
  func.func @transform_3(%arg0: i32) -> (i32, i32) {
    %c0_i32 = arith.constant 0 : i32
    %c0_i32_0 = arith.constant 0 : i32
    %c0_i32_1 = arith.constant 0 : i32
    return %c0_i32, %c0_i32_0 : i32, i32
  }
  func.func @transform_4(%arg0: i32) -> (i32, i32) {
    %c0_i32 = arith.constant 0 : i32
    %c0_i32_0 = arith.constant 0 : i32
    %c0_i32_1 = arith.constant 0 : i32
    return %c0_i32, %c0_i32_0 : i32, i32
  }
  func.func @transform_5(%arg0: i32) -> (i32, i32) {
    %c0_i32 = arith.constant 0 : i32
    %c0_i32_0 = arith.constant 0 : i32
    %c0_i32_1 = arith.constant 0 : i32
    return %c0_i32, %c0_i32_0 : i32, i32
  }
  func.func @transform_6(%arg0: i32) -> (i32, i32) {
    %c0_i32 = arith.constant 0 : i32
    %c0_i32_0 = arith.constant 0 : i32
    %c0_i32_1 = arith.constant 0 : i32
    return %c0_i32, %c0_i32_0 : i32, i32
  }
  func.func @transform_7(%arg0: i32) -> (i32, i32) {
    %c0_i32 = arith.constant 0 : i32
    %c0_i32_0 = arith.constant 0 : i32
    %c0_i32_1 = arith.constant 0 : i32
    return %c0_i32, %c0_i32_0 : i32, i32
  }
  func.func @transform_8(%arg0: i32) -> i32 {
    %c0_i32 = arith.constant 0 : i32
    %c0_i32_0 = arith.constant 0 : i32
    return %c0_i32 : i32
  }
  func.func @transform_9(%arg0: i32) -> (i32, i32) {
    %c0_i32 = arith.constant 0 : i32
    %c0_i32_0 = arith.constant 0 : i32
    return %arg0, %c0_i32 : i32, i32
  }
}

</mosaic_0001>

<bundles_post_ra>
// kernel: tpu_custom_call.1
= control target key start
LH: loop header
LB: loop body
LE: loop exit
PB: predicated region body
PF: predicated region fallthrough
CT: control target
= control target key end

     0   :  { %14 = vsyncpa [#allocation4], 0  ;;  %s999_s0 = inlined_call_operand.vmem [shape: bf16[2,8,32], index: 0, kind: input, shape index: {}]   ;;  %s1000_s1 = inlined_call_operand.vmem [shape: bf16[2,64], index: 1, kind: input, shape index: {}]   ;;  %s1001_s2 = inlined_call_operand.vmem [shape: f32[2,8], index: 2, kind: input, shape index: {}]   ;;  %s1002_s3 = inlined_call_operand.vmem [shape: f32[64,32], index: 3, kind: input, shape index: {}]   ;;  %s1003_s4 = inlined_call_operand.vmem [shape: f32[2,32], index: 4, kind: input, shape index: {}]   ;;  %s1004_s5 = inlined_call_operand.vmem [shape: f32[32,192], index: 5, kind: input, shape index: {}]   ;;  %s1005_s6 = inlined_call_operand.vmem [shape: f32[96,64], index: 6, kind: input, shape index: {}]   ;;  %s1006_s7 = inlined_call_operand.vmem [shape: f32[2,64], index: 7, kind: input, shape index: {}]   ;;  %s1007_s8 = inlined_call_operand.vmem [shape: f32[2], index: 8, kind: input, shape index: {}]   ;;  %s1008_s9 = inlined_call_operand.hbm [shape: f32[2,48], index: 9, kind: output, shape index: {}]  }
   0x1   :  { %15 = vsyncpa [#allocation3], 0  ;;  %s38_s11 = sshll.u32 %s1007_s8, 4  ;;  %s39_s11 = int_to_ptr.vmem [resolvable:$true] %s38_s11 }
   0x2   :  { %s697_s12 = scalar_lea.vmem %s39_s11, 16  ;;  %p702_p1 = scmp.lt.s32.totalorder %s39_s11, %s39_s11 }
   0x3   :  { %p698_p0 = scmp.ne.s32.totalorder %s39_s11, %s697_s12  ;;  %p703_p2 = scmp.lt.s32.totalorder %s697_s12, %s697_s12 }
   0x5   :  { %p704_p3 = por %p703_p2, %p702_p1 }
   0x7   :  { %p705_p4 = pnand %p704_p3, %p698_p0 }
   0x9   :  { %708 = shalt.err (!%p705_p4)
}
   0xa   :  { %s735_s13 = smov [#allocation2]  }
   0xb   :  { %41 = dma.vmem_to_smem %s39_s11, 16, %s735_s13, [#allocation4]  }
   0xc   :  { %731 = dma.done.wait [#allocation4], 16  }
   0xd   :  { %732 = vsyncadd [#allocation4], 4294967280 }
   0xe   :  { %45 = sfence }
   0xf   :  { %v54_v0 = vld [vmem:[%s1004_s5 + $0x8] sm:$0xff]  ;;  %v56_v1 = vld [vmem:[%s1004_s5 + $0x18] sm:$0xff]  ;;  %v53_v2 = vld [vmem:[%s1004_s5] sm:$0xff]  ;;  %v736_v7 = vmov 0.0   ;;  %v737_v8 = vmov 0.0|0.0   ;;  %vm738_vm0 = vmmov 0   ;;  %v237_v37 = vlaneseq }
  0x10   :  { %v639_v3 = vpack.c.bf16 %v56_v1, %v54_v0  ;;  %v55_v4 = vld [vmem:[%s1004_s5 + $0x10] sm:$0xff]  ;;  %v58_v5 = vld [vmem:[%s1004_s5 + $0x28] sm:$0xff]  ;;  %v60_v6 = vld [vmem:[%s1004_s5 + $0x38] sm:$0xff]  ;;  %132 = vmatprep.mubr.f32.mxu1 %v736_v7  ;;  %659 = vmatprep.subr.bf16.mxu0 %v737_v8  ;;  %vm61_vm1 = vcmask 261120   ;;  %vm159_vm2 = vcmask 523264   ;;  %vm295_vm3 = vcmask 1041409  }
  0x11   :  { %v641_v9 = vpack.c.bf16 %v55_v4, %v53_v2  ;;  %v643_v10 = vpack.c.bf16 %v60_v6, %v58_v5  ;;  %v57_v11 = vld [vmem:[%s1004_s5 + $0x20] sm:$0xff]  ;;  %v59_v12 = vld [vmem:[%s1004_s5 + $0x30] sm:$0xff]  ;;  %636 = vmatprep.mubr.msk.f32.mxu0 %vm738_vm0, %v736_v7  ;;  %v148_v16 = vld [vmem:[%s1002_s3 + $0x8] sm:$0xff]  ;;  %v739_v35 = vmov 1966171168   ;;  %v877_v39 = vshrl.u32 %v237_v37, 7 }
  0x12   :  { %640 = vmatprep.subr.bf16.mxu1 %v639_v3  ;;  %v645_v13 = vpack.c.bf16 %v59_v12, %v57_v11  ;;  %v825_v14 = vld [vmem:[%s999_s0] sm:$0xff]   ;;  %v149_v19 = vld [vmem:[%s1002_s3 + $0x10] sm:$0xff]  ;;  %v150_v20 = vld [vmem:[%s1002_s3 + $0x18] sm:$0xff]  ;;  %v235_v36 = vunpack.c.l.s4 %v739_v35  ;;  %v898_v61 = vand.u32 127, %v237_v37  ;;  %vm299_vm5 = vcmask 58368   ;;  %s742_s29 = smov [#allocation5]  }
  0x13   :  { %642 = vmatpush1.bf16.msra.mxu1 %v641_v9  ;;  %v147_v15 = vld [vmem:[%s1002_s3] sm:$0xff]  ;;  %v569_v17 = vunpack.c.l.bf16 %v825_v14  ;;  %v570_v21 = vunpack.c.h.bf16 %v825_v14  ;;  %v651_v22 = vpack.c.bf16 %v150_v20, %v149_v19  ;;  %v152_v24 = vld [vmem:[%s1002_s3 + $0x28] sm:$0xff]  ;;  %v153_v26 = vld [vmem:[%s1002_s3 + $0x30] sm:$0xff]  ;;  %v887_v46 = vsub.s32 0, %v877_v39  ;;  %s549_s30 = sshll.u32 %s742_s29, 4  ;;  %s550_s30 = int_to_ptr.vmem [resolvable:$true] %s549_s30 }
  0x14   :  { %644 = vmatprep.subr.bf16.mxu1 %v643_v10  ;;  %v648_v18 = vpack.c.bf16 %v148_v16, %v147_v15  ;;  %v151_v23 = vld [vmem:[%s1002_s3 + $0x20] sm:$0xff]  ;;  %v154_v27 = vld [vmem:[%s1002_s3 + $0x38] sm:$0xff]  ;;  %v236_v38 = vunpack.c.0.s8 %v235_v36  ;;  %v289_v63 = vsub.s32 %v898_v61, %v877_v39  ;;  %v320_v15 = vsub.s32 1, %v877_v39  ;;  %v354_v35 = vld [vmem:[%s1005_s6 + $0x30] sm:$0xff]  ;;  %s709_s10 = scalar_lea.vmem %s550_s30, 32  ;;  %p714_p6 = scmp.lt.s32.totalorder %s550_s30, %s550_s30 }
  0x15   :  { %v654_v25 = vpack.c.bf16 %v152_v24, %v151_v23  ;;  %v657_v28 = vpack.c.bf16 %v154_v27, %v153_v26  ;;  %v866_v29 = vld [vmem:[%s1000_s1] sm:$0x1]  ;;  %v562_v54 = vld [vmem:[%s1003_s4 + $0x1] ss:$0 sm:$0xff]  ;;  %v349_v23 = vld [vmem:[%s1005_s6 + $0x8] sm:$0xff]  ;;  %vm365_vm6 = vcmask 785408   ;;  %p710_p5 = scmp.ne.s32.totalorder %s550_s30, %s709_s10  ;;  %p715_p7 = scmp.lt.s32.totalorder %s709_s10, %s709_s10 }
  0x16   :  { %v51_v30 = vunpack.c.l.bf16 %v866_v29  ;;  %v560_v40 = vld [vmem:[%s1003_s4] ss:$0 sm:$0xff]  ;;  %v883_v41 = vsub.s32 %v236_v38, %v877_v39  ;;  %v350_v24 = vld [vmem:[%s1005_s6 + $0x10] sm:$0xff]  ;;  %v351_v26 = vld [vmem:[%s1005_s6 + $0x18] sm:$0xff]  ;;  %s566_s4 = sld [smem:[#allocation2 + $0x1]]  ;;  %vm539_vm7 = vcmask 326656  }
  0x17   :  { %646 = vmatpush1.bf16.msra.mxu1 %v645_v13  ;;  %v52_v0 = vld [vmem:[%s1001_s2] sm:$0x3]  ;;  %v663_v27 = vpack.c.bf16 %v351_v26, %v350_v24  ;;  %v355_v36 = vld [vmem:[%s1005_s6 + $0x38] sm:$0xff]  ;;  %s741_s2 = smov 96   ;;  %vm541_vm8 = vcmask 386048   ;;  %p716_p8 = por %p715_p7, %p714_p6 }
  0x18   :  { %647 = vmatprep.subr.bf16.mxu1 %v737_v8  ;;  %vm282_vm4 = vcmp.gt.f32.partialorder %v52_v0, 0.5  ;;  %v669_v37 = vpack.c.bf16 %v355_v36, %v354_v35  ;;  %v356_v38 = vld [vmem:[%s1005_s6 + $0x40] sm:$0xff] }
  0x19   :  { %p717_p9 = pnand %p716_p8, %p710_p5 }
  0x1a   :  { %558 = vmatmul.mubr.msk.f32.vlgmr.msra.gmra.mrb[0].mxu1 %vm61_vm1, %v569_v17 }
  0x1b   :  { %649 = vmatpush3.bf16.msra.mxu1 %v648_v18  ;;  %138 = vmatprep.mubr.f32.mxu1 %v736_v7 }
  0x1c   :  { %650 = vmatprep.subr.bf16.mxu1 %v737_v8 }
  0x1e   :  { %559 = vmatmul.mubr.msk.f32.gmra.mrb[2].mxu1 %vm61_vm1, %v570_v21 }
  0x1f   :  { %652 = vmatpush3.bf16.msra.mxu1 %v651_v22  ;;  %609 = vmatprep.mubr.msk.f32.mxu1 %vm738_vm0, %v736_v7  ;;  %v348_v22 = vld [vmem:[%s1005_s6] sm:$0xff] }
  0x20   :  { %653 = vmatprep.subr.bf16.mxu1 %v737_v8 }
  0x23   :  { %655 = vmatpush3.bf16.msra.mxu1 %v654_v25  ;;  %v660_v25 = vpack.c.bf16 %v349_v23, %v348_v22  ;;  %v514_v23 = vadd.s32 4294967264, %v898_v61 }
  0x24   :  { %656 = vmatprep.subr.bf16.mxu1 %v737_v8 }
  0x25   :  { %661 = vmatpush3.bf16.msra.mxu0 %v660_v25 }
  0x26   :  { %662 = vmatprep.subr.bf16.mxu0 %v737_v8 }
  0x27   :  { %658 = vmatpush3.bf16.msra.mxu1 %v657_v28  ;;  %v352_v28 = vld [vmem:[%s1005_s6 + $0x20] sm:$0xff] }
  0x29   :  { %664 = vmatpush3.bf16.msra.mxu0 %v663_v27  ;;  %v527_v27 = vadd.s32 4294967256, %v898_v61 }
  0x2a   :  { %610 = vmatmul.mubr.msk.f32.vlgmr.msra.gmra.mrb[4].mxu1 %vm159_vm2, %v51_v30  ;;  %665 = vmatprep.subr.bf16.mxu0 %v737_v8 }
  0xed   :  { %v134_v31 = vpop.f32.mrb[0].mxu1 }
  0xee   :  { %v873_v32 = vpop.f32.mrb[1].mxu1 }
  0xf1   :  { %v140_v33 = vpop.f32.mrb[2].mxu1 }
  0xf2   :  { %v875_v34 = vpop.f32.mrb[3].mxu1 }
  0xfd   :  { %v229_v42 = vpop.f32.mrb[4].mxu1 }
  0xfe   :  { %v230_v43 = vadd.f32 %v560_v40, %v229_v42  ;;  %v611_v44 = vpop.f32.mrb[5].mxu1  ;;  %v357_v40 = vld [vmem:[%s1005_s6 + $0x48] sm:$0xff] }
  0xff   :  { %v672_v42 = vpack.c.bf16 %v357_v40, %v356_v38  ;;  %v359_v44 = vld [vmem:[%s1005_s6 + $0x58] sm:$0xff] }
 0x100   :  { %v240_v45 = vrot.slane %v230_v43, %v883_v41  ;;  %v358_v43 = vld [vmem:[%s1005_s6 + $0x50] sm:$0xff] }
 0x102   :  { %v241_v47 = vcombine.high %v240_v45, %v240_v45  ;;  %v248_v48 = vrot.slane %v240_v45, %v883_v41  ;;  %v675_v45 = vpack.c.bf16 %v359_v44, %v358_v43 }
 0x104   :  { %v255_v49 = vrot.slane %v241_v47, %v883_v41  ;;  %v259_v50 = vrot.slane %v248_v48, %v887_v46 }
 0x106   :  { %v263_v51 = vrot.slane %v255_v49, %v887_v46  ;;  %v266_v52 = vadd.f32 %v259_v50, %v134_v31  ;;  %v353_v31 = vld [vmem:[%s1005_s6 + $0x28] sm:$0xff]  ;;  %s740_s6 = smov 64  }
 0x108   :  { %v267_v53 = vadd.f32 %v263_v51, %v140_v33  ;;  %685 = vtanh.f32 %v266_v52  ;;  %v666_v33 = vpack.c.bf16 %v353_v31, %v352_v28  ;;  %v517_v28 = vsub.s32 %v514_v23, %v877_v39 }
 0x10a   :  { %687 = vtanh.f32 %v267_v53  ;;  %667 = vmatpush3.bf16.msra.mxu0 %v666_v33  ;;  %v508_v33 = vstv %s566_s4 }
 0x10b   :  { %668 = vmatprep.subr.bf16.mxu0 %v737_v8 }
 0x10e   :  { %670 = vmatpush3.bf16.msra.mxu0 %v669_v37  ;;  %v530_v37 = vsub.s32 %v527_v27, %v877_v39 }
 0x10f   :  { %671 = vmatprep.subr.bf16.mxu0 %v737_v8 }
 0x112   :  { %v686_v55 = vpop.eup %685  ;;  %673 = vmatpush3.bf16.msra.mxu0 %v672_v42 }
 0x113   :  { %v274_v56 = vmul.f32 %v686_v55, %v562_v54  ;;  %674 = vmatprep.subr.bf16.mxu0 %v737_v8 }
 0x114   :  { %v688_v57 = vpop.eup %687 }
 0x115   :  { %v276_v58 = vsel %vm61_vm1, %v274_v56, 0.0  ;;  %v275_v59 = vmul.f32 %v688_v57, %v562_v54 }
 0x116   :  { %277 = vadd.xlane.f32.xlu0 %v276_v58  ;;  %676 = vmatpush3.bf16.msra.mxu0 %v675_v45 }
 0x117   :  { %v279_v60 = vsel %vm61_vm1, %v275_v59, 0.0 }
 0x11a   :  { %280 = vadd.xlane.f32.xlu0 %v279_v60 }
 0x1a3   :  { %v278_v62 = vpop.xlane.xlu0 %277 }
 0x1a4   :  { %v290_v2 = vrot.slane %v278_v62, %v289_v63 }
 0x1a7   :  { %v281_v1 = vpop.xlane.xlu0 %280 }
 0x1a8   :  { %v294_v3 = vrot.slane %v281_v1, %v289_v63  ;;  %v563_v1 = vld [vmem:[%s1006_s7] ss:$0 sm:$0xff] }
 0x1aa   :  { %v296_v4 = vsel %vm295_vm3, %v294_v3, %v290_v2 }
 0x1ab   :  { %v298_v5 = vsel %vm282_vm4, -1e+30, %v296_v4 }
 0x1ac   :  { %v300_v6 = vsel %vm299_vm5, %v298_v5, -inf }
 0x1ad   :  { %301 = vmax.xlane.f32.xlu1 %v300_v6 }
 0x23a   :  { %v302_v7 = vpop.xlane.xlu1 %301 }
 0x23b   :  { %v303_v9 = vsub.f32 %v298_v5, %v302_v7 }
 0x23d   :  { %v304_v10 = vmul.f32 1.442695, %v303_v9 }
 0x23f   :  { %689 = vpow2.f32 %v304_v10 }
 0x249   :  { %v690_v11 = vpop.eup %689 }
 0x24a   :  { %v306_v12 = vsel %vm299_vm5, %v690_v11, 0.0 }
 0x24b   :  { %307 = vadd.xlane.f32.xlu1 %v306_v12  ;;  %v565_v12 = vld [vmem:[%s1006_s7 + $0x1] ss:$0 sm:$0xff]  ;;  %s489_s7 = sld [smem:[#allocation2]] }
 0x251   :  { %v490_v25 = vstv %s489_s7 }
 0x2d8   :  { %v308_v13 = vpop.xlane.xlu1 %307 }
 0x2d9   :  { %691 = vrcp.f32 %v308_v13 }
 0x2e3   :  { %v692_v16 = vpop.eup %691 }
 0x2e4   :  { %v310_v18 = vmul.f32 %v692_v16, %v690_v11 }
 0x2e6   :  { %v321_v19 = vrot.slane %v310_v18, %v320_v15  ;;  %v314_v20 = vrot.slane %v310_v18, %v887_v46 }
 0x2e8   :  { %323 = vbcast.lane.b32.xlu1 %v321_v19, 256  ;;  %316 = vbcast.lane.b32.xlu0 %v314_v20, 256 }
 0x35a   :  { %v324_v47 = vpop.permute.xlu1 %323  ;;  %v317_v48 = vpop.permute.xlu0 %316 }
 0x35b   :  { %v326_v49 = vmul.f32 %v570_v21, %v324_v47  ;;  %v325_v50 = vmul.f32 %v569_v17, %v317_v48 }
 0x35d   :  { %v334_v51 = vsel %vm61_vm1, %v326_v49, 0.0  ;;  %v327_v52 = vsel %vm61_vm1, %v325_v50, 0.0 }
 0x35e   :  { %v335_v53 = vrot.slane %v334_v51, 4  ;;  %v328_v54 = vrot.slane %v327_v52, 4 }
 0x360   :  { %v336_v55 = vadd.f32 %v335_v53, %v334_v51  ;;  %v329_v56 = vadd.f32 %v328_v54, %v327_v52 }
 0x362   :  { %v337_v57 = vrot.slane %v336_v55, 2  ;;  %v330_v58 = vrot.slane %v329_v56, 2 }
 0x364   :  { %v338_v8 = vadd.f32 %v337_v57, %v336_v55  ;;  %v331_v59 = vadd.f32 %v330_v58, %v329_v56 }
 0x366   :  { %v339_v60 = vrot.slane %v338_v8, 1  ;;  %v332_v62 = vrot.slane %v331_v59, 1 }
 0x368   :  { %v333_v63 = vadd.f32 %v332_v62, %v331_v59  ;;  %v340_v0 = vadd.f32 %v339_v60, %v338_v8 }
 0x36a   :  { %v956_v21 = vsel %vm295_vm3, %v340_v0, %v333_v63 }
 0x36b   :  { %344 = vrot.lane.b32.xlu1 %v956_v21, %s740_s6 }
 0x3dd   :  { %v345_v14 = vpop.permute.xlu1 %344 }
 0x3de   :  { %v347_v17 = vsel %vm159_vm2, %v51_v30, %v345_v14 }
 0x3df   :  { %637 = vmatmul.mubr.msk.f32.vlgmr.msra.gmra.mrb[0].mxu0 %vm365_vm6, %v347_v17 }
 0x4b2   :  { %v435_v2 = vpop.f32.mrb[0].mxu0 }
 0x4b3   :  { %v436_v3 = vadd.f32 %v563_v1, %v435_v2  ;;  %v638_v4 = vpop.f32.mrb[1].mxu0 }
 0x4b5   :  { %v446_v5 = vrot.slane %v436_v3, %v883_v41 }
 0x4b7   :  { %v447_v6 = vcombine.high %v446_v5, %v446_v5  ;;  %v454_v7 = vrot.slane %v446_v5, %v883_v41 }
 0x4b9   :  { %v461_v9 = vrot.slane %v447_v6, %v883_v41  ;;  %v465_v10 = vrot.slane %v454_v7, %v887_v46 }
 0x4bb   :  { %v469_v29 = vrot.slane %v461_v9, %v887_v46  ;;  %v472_v30 = vadd.f32 %v465_v10, %v873_v32 }
 0x4bd   :  { %v473_v11 = vadd.f32 %v469_v29, %v875_v34  ;;  %693 = vtanh.f32 %v472_v30 }
 0x4bf   :  { %695 = vtanh.f32 %v473_v11 }
 0x4c7   :  { %v694_v13 = vpop.eup %693 }
 0x4c8   :  { %v481_v15 = vmul.f32 %v694_v13, %v565_v12 }
 0x4c9   :  { %v696_v16 = vpop.eup %695 }
 0x4ca   :  { %495 = vrot.lane.b32.xlu1 %v481_v15, %s741_s2  ;;  %v482_v41 = vmul.f32 %v696_v16, %v565_v12  ;;  %v483_v32 = vsel %vm61_vm1, %v481_v15, 0.0 }
 0x4cc   :  { %497 = vrot.lane.b32.xlu0 %v482_v41, %s741_s2  ;;  %v486_v18 = vsel %vm61_vm1, %v482_v41, 0.0 }
 0x4eb   :  { %487 = vadd.xlane.f32.xlu0 %v486_v18 }
 0x4ee   :  { %484 = vadd.xlane.f32.xlu1 %v483_v32 }
 0x53c   :  { %v496_v34 = vpop.permute.xlu1 %495 }
 0x53d   :  { %v501_v46 = vsel %vm61_vm1, %v496_v34, 0.0 }
 0x53e   :  { %v498_v19 = vpop.permute.xlu0 %497  ;;  %502 = vadd.xlane.f32.xlu0 %v501_v46 }
 0x53f   :  { %v504_v20 = vsel %vm61_vm1, %v498_v19, 0.0 }
 0x542   :  { %505 = vadd.xlane.f32.xlu0 %v504_v20 }
 0x578   :  { %v488_v24 = vpop.xlane.xlu0 %487 }
 0x579   :  { %v492_v31 = vadd.f32 %v490_v25, %v488_v24 }
 0x57b   :  { %v485_v22 = vpop.xlane.xlu1 %484  ;;  %v522_v40 = vrot.slane %v492_v31, %v517_v28 }
 0x57c   :  { %v491_v26 = vadd.f32 %v490_v25, %v485_v22 }
 0x57e   :  { %v518_v36 = vrot.slane %v491_v26, %v517_v28 }
 0x580   :  { %v523_v44 = vsel %vm295_vm3, %v522_v40, %v518_v36 }
 0x581   :  { %v538_v48 = vsel %vm61_vm1, %v956_v21, %v523_v44 }
 0x5cb   :  { %v503_v35 = vpop.xlane.xlu0 %502 }
 0x5cc   :  { %v509_v38 = vadd.f32 %v508_v33, %v503_v35 }
 0x5ce   :  { %v531_v45 = vrot.slane %v509_v38, %v530_v37 }
 0x5cf   :  { %v506_v42 = vpop.xlane.xlu0 %505 }
 0x5d0   :  { %v510_v43 = vadd.f32 %v508_v33, %v506_v42 }
 0x5d2   :  { %v535_v47 = vrot.slane %v510_v43, %v530_v37 }
 0x5d4   :  { %v536_v61 = vsel %vm295_vm3, %v535_v47, %v531_v45 }
 0x5d5   :  { %v540_v49 = vsel %vm539_vm7, %v538_v48, %v536_v61 }
 0x5d6   :  { %542 = vst.msk [vmem:[#allocation5] sm:$0x3] %vm541_vm8, %v540_v49 }
 0x5d7   :  { %720 = shalt.err (!%p717_p9)
}
 0x5d8   :  { %s721_s13 = scalar_lea.hbm %s1008_s9, 32 }
 0x5d9   :  { %p722_p10 = scmp.ne.s32.totalorder %s1008_s9, %s721_s13  ;;  %p725_p11 = scmp.lt.u32.totalorder %s721_s13, %s1008_s9 }
 0x5db   :  { %p727_p12 = pnand %p725_p11, %p722_p10 }
 0x5dd   :  { %730 = shalt.err (!%p727_p12)
}
 0x5de   :  { %552 = dma.vmem_to_hbm [thread:$0]  %s550_s30, 32, %s1008_s9, [#allocation3]  }
 0x5df   :  { %733 = dma.done.wait [#allocation3], 32  }
 0x5e0   :  { %734 = vsyncadd [#allocation3], 4294967264 }
 0x5e1   :  { %556 = vsyncpa [#allocation3], 1 }
 0x5e2   :  { %557 = vsyncpa [#allocation4], 1 }

</bundles_post_ra>
